<compile_context>
chip_gen: v5e
topology: v5e:2x2
jax: 0.10.0
libtpu: 0.0.40
codegen_flags: <defaults>
</compile_context>

<pallas_src>
import jax
import jax.numpy as jnp
from jax.experimental import pallas as pl
from jax.experimental.pallas import tpu as pltpu


def _round_up(x, m):
    return ((x + m - 1) // m) * m


def actor_kernel(x_ref, w1_ref, b1_ref, w2_ref, b2_ref, w3_ref, b3_ref, o_ref):
    x = x_ref[...]
    # layer1 + ReLU (accumulate in f32 regardless of input dtype)
    h1 = jnp.dot(x, w1_ref[...], preferred_element_type=jnp.float32) + b1_ref[...]
    h1 = jnp.maximum(h1, 0.0)
    # layer2 + ReLU
    h2 = jnp.dot(h1.astype(w2_ref.dtype), w2_ref[...],
                 preferred_element_type=jnp.float32) + b2_ref[...]
    h2 = jnp.maximum(h2, 0.0)
    # layer3 + Tanh / 10  (tanh lowers to the EUP slot; keep the divide for
    # exact parity with the PyTorch module's `x / 10`)
    h3 = jnp.dot(h2.astype(w3_ref.dtype), w3_ref[...],
                 preferred_element_type=jnp.float32) + b3_ref[...]
    o_ref[...] = (jnp.tanh(h3) / 10.0).astype(o_ref.dtype)


def actor_forward(x, params, *, block_batch=1024, compute_dtype=jnp.float32):
    w1, b1, w2, b2, w3, b3 = params
    batch, n_input = x.shape
    n_hidden = w1.shape[1]
    n_output = w3.shape[1]

    # --- lane-dense hidden dim: pad weights/biases once (zeros propagate
    #     exactly through ReLU -> bit-identical results). Weights are tiny and
    #     VMEM-resident, so this adds no meaningful HBM traffic. ---
    nh_p = _round_up(n_hidden, 128)
    if nh_p != n_hidden:
        dh = nh_p - n_hidden
        w1 = jnp.pad(w1, ((0, 0), (0, dh)))
        b1 = jnp.pad(b1, ((0, 0), (0, dh)))
        w2 = jnp.pad(w2, ((0, dh), (0, dh)))
        b2 = jnp.pad(b2, ((0, 0), (0, dh)))
        w3 = jnp.pad(w3, ((0, dh), (0, 0)))

    # --- optional reduced-precision compute (halves x/weight HBM reads).
    #     Biases, accumulation and output stay f32. ---
    if compute_dtype != jnp.float32:
        x = x.astype(compute_dtype)
        w1 = w1.astype(compute_dtype)
        w2 = w2.astype(compute_dtype)
        w3 = w3.astype(compute_dtype)
    itemsize = jnp.dtype(compute_dtype).itemsize
    row_align = 8 * (4 // itemsize)  # 8 rows for f32, 16 for bf16 (sublane packing)

    # --- batch tiling: no padded copy of x.  >=2 grid steps when possible so
    #     v7x megacore sharding has work on both TensorCores; tail block uses
    #     Pallas OOB read/discarded-write semantics. ---
    if batch <= row_align:
        tb = batch  # single block; block dim == full array dim is always legal
    else:
        tb = min(block_batch, max(row_align, _round_up(pl.cdiv(batch, 2), row_align)))
    grid = (pl.cdiv(batch, tb),)

    # --- scheduler hint (logical work) ---
    flops = 2 * batch * (n_input * nh_p + nh_p * nh_p + nh_p * n_output)
    bytes_accessed = (
        batch * n_input * itemsize + batch * n_output * 4
        + (n_input * nh_p + nh_p * nh_p + nh_p * n_output) * itemsize
        + (2 * nh_p + n_output) * 4
    )
    cost = pl.CostEstimate(
        flops=flops, transcendentals=batch * n_output, bytes_accessed=bytes_accessed
    )

    # --- VMEM budget from physically padded tiles (last dim -> 128 lanes,
    #     second-to-last -> 8 sublanes) + h1/h2/h3 staging + slack. ---
    lanes = lambda n: _round_up(n, 128)
    subl = lambda n: _round_up(n, 8)
    vmem_bytes = (
        2 * subl(tb) * lanes(n_input) * itemsize      # x tile, double-buffered
        + 2 * subl(tb) * lanes(n_output) * 4          # out tile, double-buffered
        + subl(n_input) * lanes(nh_p) * itemsize      # w1 (resident)
        + subl(nh_p) * lanes(nh_p) * itemsize         # w2
        + subl(nh_p) * lanes(n_output) * itemsize     # w3
        + 3 * subl(1) * lanes(nh_p) * 4               # b1, b2 (+ slack), b3
        + 3 * subl(tb) * lanes(nh_p) * 4              # h1 / h2 / h3 intermediates
    )
    vmem_bytes = int(min(vmem_bytes + (4 << 20), 48 << 20))  # safe on v5e..v7x

    out = pl.pallas_call(
        actor_kernel,
        out_shape=jax.ShapeDtypeStruct((batch, n_output), jnp.float32),
        grid=grid,
        in_specs=[
            pl.BlockSpec((tb, n_input), lambda i: (i, 0)),        # x tile (pipelined)
            pl.BlockSpec((n_input, nh_p), lambda i: (0, 0)),      # w1 (resident)
            pl.BlockSpec((1, nh_p), lambda i: (0, 0)),            # b1
            pl.BlockSpec((nh_p, nh_p), lambda i: (0, 0)),         # w2
            pl.BlockSpec((1, nh_p), lambda i: (0, 0)),            # b2
            pl.BlockSpec((nh_p, n_output), lambda i: (0, 0)),     # w3
            pl.BlockSpec((1, n_output), lambda i: (0, 0)),        # b3
        ],
        out_specs=pl.BlockSpec((tb, n_output), lambda i: (i, 0)),
        compiler_params=pltpu.CompilerParams(
            dimension_semantics=("parallel",),   # megacore sharding on v7x
            vmem_limit_bytes=vmem_bytes,
        ),
        cost_estimate=cost,
    )(x, w1, b1, w2, b2, w3, b3)

    return out


def xavier_uniform(key, fan_in, fan_out, gain=1.0):
    # matches torch.nn.init.xavier_uniform_ (gain=1); returns [fan_in, fan_out]
    limit = gain * jnp.sqrt(6.0 / (fan_in + fan_out))
    return jax.random.uniform(
        key, (fan_in, fan_out), dtype=jnp.float32, minval=-limit, maxval=limit
    )


def init_actor_params(key, n_input, n_output, n_hidden):
    k1, k2, k3 = jax.random.split(key, 3)
    w1 = xavier_uniform(k1, n_input, n_hidden)
    b1 = jnp.zeros((1, n_hidden), dtype=jnp.float32)
    w2 = xavier_uniform(k2, n_hidden, n_hidden)
    b2 = jnp.zeros((1, n_hidden), dtype=jnp.float32)
    w3 = xavier_uniform(k3, n_hidden, n_output)
    b3 = jnp.zeros((1, n_output), dtype=jnp.float32)
    return (w1, b1, w2, b2, w3, b3)


def actor_reference(x, params):
    w1, b1, w2, b2, w3, b3 = params
    hp = jax.lax.Precision.HIGHEST
    h = jnp.maximum(jnp.dot(x, w1, precision=hp) + b1, 0.0)
    h = jnp.maximum(jnp.dot(h, w2, precision=hp) + b2, 0.0)
    return jnp.tanh(jnp.dot(h, w3, precision=hp) + b3) / 10.0


if __name__ == "__main__":
    key = jax.random.PRNGKey(0)
    n_input, n_hidden, n_output = 16, 32, 8

    pkey, xkey1, xkey2 = jax.random.split(key, 3)
    params = init_actor_params(pkey, n_input, n_output, n_hidden)

    # Small case matching the module's toy usage (batch=2, single full block).
    x_small = jax.random.normal(xkey1, (2, n_input), dtype=jnp.float32)
    out_small = jax.block_until_ready(actor_forward(x_small, params))
    ref_small = actor_reference(x_small, params)
    assert out_small.shape == (2, n_output)
    assert jnp.allclose(out_small, ref_small, atol=1e-5, rtol=1e-5), "mismatch (small)"

    # Larger, non-tile-multiple batch: exercises the >=2-step grid and the
    # partial (OOB-masked) tail block without any padded copy of x.
    x_big = jax.random.normal(xkey2, (1000, n_input), dtype=jnp.float32)
    out_big = jax.block_until_ready(actor_forward(x_big, params, block_batch=1024))
    ref_big = actor_reference(x_big, params)
    assert out_big.shape == (1000, n_output)
    assert jnp.allclose(out_big, ref_big, atol=1e-5, rtol=1e-5), "mismatch (big)"

    print("KERNEL_OK")
</pallas_src>

<mosaic_0001>
module attributes {stable_mosaic.version = 11 : i64} {
  func.func @actor_kernel(%arg0: i32, %arg1: memref<2x16xf32, #tpu.memory_space<vmem>>, %arg2: memref<16x128xf32, #tpu.memory_space<vmem>>, %arg3: memref<1x128xf32, #tpu.memory_space<vmem>>, %arg4: memref<128x128xf32, #tpu.memory_space<vmem>>, %arg5: memref<1x128xf32, #tpu.memory_space<vmem>>, %arg6: memref<128x8xf32, #tpu.memory_space<vmem>>, %arg7: memref<1x8xf32, #tpu.memory_space<vmem>>, %arg8: memref<2x8xf32, #tpu.memory_space<vmem>>) attributes {dimension_semantics = [#tpu.dimension_semantics<parallel>], iteration_bounds = array<i64: 1>, scalar_prefetch = 0 : i64, scratch_operands = 0 : i64, tpu.core_type = #tpu.core_type<tc>, window_params = [{transform_indices = @transform_0, window_bounds = array<i64: 2, 16>}, {pipeline_mode = #tpu.pipeline_mode<synchronous>, transform_indices = @transform_1, window_bounds = array<i64: 16, 128>}, {pipeline_mode = #tpu.pipeline_mode<synchronous>, transform_indices = @transform_2, window_bounds = array<i64: 1, 128>}, {pipeline_mode = #tpu.pipeline_mode<synchronous>, transform_indices = @transform_3, window_bounds = array<i64: 128, 128>}, {pipeline_mode = #tpu.pipeline_mode<synchronous>, transform_indices = @transform_4, window_bounds = array<i64: 1, 128>}, {pipeline_mode = #tpu.pipeline_mode<synchronous>, transform_indices = @transform_5, window_bounds = array<i64: 128, 8>}, {pipeline_mode = #tpu.pipeline_mode<synchronous>, transform_indices = @transform_6, window_bounds = array<i64: 1, 8>}, {transform_indices = @transform_7, window_bounds = array<i64: 2, 8>}]} {
    %c0 = arith.constant 0 : index
    %c0_0 = arith.constant 0 : index
    %0 = vector.load %arg1[%c0, %c0_0] : memref<2x16xf32, #tpu.memory_space<vmem>>, vector<2x16xf32>
    %c0_1 = arith.constant 0 : index
    %c0_2 = arith.constant 0 : index
    %1 = vector.load %arg2[%c0_1, %c0_2] : memref<16x128xf32, #tpu.memory_space<vmem>>, vector<16x128xf32>
    %cst = arith.constant dense<0.000000e+00> : vector<2x128xf32>
    %2 = tpu.matmul %0, %1, %cst {dimension_numbers = #tpu.dot_dimension_numbers<[1], [0], [0], [1], [0, 0, 1, 1], [], []>} : vector<2x16xf32>, vector<16x128xf32>, vector<2x128xf32> -> vector<2x128xf32>
    %c0_3 = arith.constant 0 : index
    %c0_4 = arith.constant 0 : index
    %3 = vector.load %arg3[%c0_3, %c0_4] : memref<1x128xf32, #tpu.memory_space<vmem>>, vector<1x128xf32>
    %4 = vector.broadcast %3 : vector<1x128xf32> to vector<2x128xf32>
    %5 = arith.addf %2, %4 : vector<2x128xf32>
    %cst_5 = arith.constant 0.000000e+00 : f32
    %6 = vector.broadcast %cst_5 : f32 to vector<2x128xf32>
    %7 = arith.maximumf %5, %6 : vector<2x128xf32>
    %c0_6 = arith.constant 0 : index
    %c0_7 = arith.constant 0 : index
    %8 = vector.load %arg4[%c0_6, %c0_7] : memref<128x128xf32, #tpu.memory_space<vmem>>, vector<128x128xf32>
    %cst_8 = arith.constant dense<0.000000e+00> : vector<2x128xf32>
    %9 = tpu.matmul %7, %8, %cst_8 {dimension_numbers = #tpu.dot_dimension_numbers<[1], [0], [0], [1], [0, 0, 1, 1], [], []>} : vector<2x128xf32>, vector<128x128xf32>, vector<2x128xf32> -> vector<2x128xf32>
    %c0_9 = arith.constant 0 : index
    %c0_10 = arith.constant 0 : index
    %10 = vector.load %arg5[%c0_9, %c0_10] : memref<1x128xf32, #tpu.memory_space<vmem>>, vector<1x128xf32>
    %11 = vector.broadcast %10 : vector<1x128xf32> to vector<2x128xf32>
    %12 = arith.addf %9, %11 : vector<2x128xf32>
    %cst_11 = arith.constant 0.000000e+00 : f32
    %13 = vector.broadcast %cst_11 : f32 to vector<2x128xf32>
    %14 = arith.maximumf %12, %13 : vector<2x128xf32>
    %c0_12 = arith.constant 0 : index
    %c0_13 = arith.constant 0 : index
    %15 = vector.load %arg6[%c0_12, %c0_13] : memref<128x8xf32, #tpu.memory_space<vmem>>, vector<128x8xf32>
    %cst_14 = arith.constant dense<0.000000e+00> : vector<2x8xf32>
    %16 = tpu.matmul %14, %15, %cst_14 {dimension_numbers = #tpu.dot_dimension_numbers<[1], [0], [0], [1], [0, 0, 1, 1], [], []>} : vector<2x128xf32>, vector<128x8xf32>, vector<2x8xf32> -> vector<2x8xf32>
    %c0_15 = arith.constant 0 : index
    %c0_16 = arith.constant 0 : index
    %17 = vector.load %arg7[%c0_15, %c0_16] : memref<1x8xf32, #tpu.memory_space<vmem>>, vector<1x8xf32>
    %18 = vector.broadcast %17 : vector<1x8xf32> to vector<2x8xf32>
    %19 = arith.addf %16, %18 : vector<2x8xf32>
    %20 = math.tanh %19 : vector<2x8xf32>
    %cst_17 = arith.constant 1.000000e+01 : f32
    %21 = vector.broadcast %cst_17 : f32 to vector<2x8xf32>
    %22 = arith.divf %20, %21 : vector<2x8xf32>
    %c0_18 = arith.constant 0 : index
    %c0_19 = arith.constant 0 : index
    %23 = vector.load %arg8[%c0_18, %c0_19] : memref<2x8xf32, #tpu.memory_space<vmem>>, vector<2x8xf32>
    tpu.vector_store %arg8[%c0_18, %c0_19], %22 {strides = array<i32>} : memref<2x8xf32, #tpu.memory_space<vmem>>, vector<2x8xf32>,
    return
  }
  func.func @transform_0(%arg0: i32) -> (i32, i32) {
    %c0_i32 = arith.constant 0 : i32
    %c0_i32_0 = arith.constant 0 : i32
    return %arg0, %c0_i32 : i32, i32
  }
  func.func @transform_1(%arg0: i32) -> (i32, i32) {
    %c0_i32 = arith.constant 0 : i32
    %c0_i32_0 = arith.constant 0 : i32
    %c0_i32_1 = arith.constant 0 : i32
    return %c0_i32, %c0_i32_0 : i32, i32
  }
  func.func @transform_2(%arg0: i32) -> (i32, i32) {
    %c0_i32 = arith.constant 0 : i32
    %c0_i32_0 = arith.constant 0 : i32
    %c0_i32_1 = arith.constant 0 : i32
    return %c0_i32, %c0_i32_0 : i32, i32
  }
  func.func @transform_3(%arg0: i32) -> (i32, i32) {
    %c0_i32 = arith.constant 0 : i32
    %c0_i32_0 = arith.constant 0 : i32
    %c0_i32_1 = arith.constant 0 : i32
    return %c0_i32, %c0_i32_0 : i32, i32
  }
  func.func @transform_4(%arg0: i32) -> (i32, i32) {
    %c0_i32 = arith.constant 0 : i32
    %c0_i32_0 = arith.constant 0 : i32
    %c0_i32_1 = arith.constant 0 : i32
    return %c0_i32, %c0_i32_0 : i32, i32
  }
  func.func @transform_5(%arg0: i32) -> (i32, i32) {
    %c0_i32 = arith.constant 0 : i32
    %c0_i32_0 = arith.constant 0 : i32
    %c0_i32_1 = arith.constant 0 : i32
    return %c0_i32, %c0_i32_0 : i32, i32
  }
  func.func @transform_6(%arg0: i32) -> (i32, i32) {
    %c0_i32 = arith.constant 0 : i32
    %c0_i32_0 = arith.constant 0 : i32
    %c0_i32_1 = arith.constant 0 : i32
    return %c0_i32, %c0_i32_0 : i32, i32
  }
  func.func @transform_7(%arg0: i32) -> (i32, i32) {
    %c0_i32 = arith.constant 0 : i32
    %c0_i32_0 = arith.constant 0 : i32
    return %arg0, %c0_i32 : i32, i32
  }
}

</mosaic_0001>

<bundles_post_ra>
// kernel: tpu_custom_call.1
= control target key start
LH: loop header
LB: loop body
LE: loop exit
PB: predicated region body
PF: predicated region fallthrough
CT: control target
= control target key end

     0   :  { %12 = vsyncpa [#allocation3], 0  ;;  %s408_s0 = inlined_call_operand.vmem [shape: f32[2,16], index: 0, kind: input, shape index: {}]   ;;  %s409_s1 = inlined_call_operand.hbm [shape: f32[16,128], index: 1, kind: input, shape index: {}]   ;;  %s410_s2 = inlined_call_operand.vmem [shape: f32[1,128], index: 2, kind: input, shape index: {}]   ;;  %s411_s3 = inlined_call_operand.vmem [shape: f32[128,128], index: 3, kind: input, shape index: {}]   ;;  %s412_s4 = inlined_call_operand.vmem [shape: f32[1,128], index: 4, kind: input, shape index: {}]   ;;  %s413_s5 = inlined_call_operand.vmem [shape: f32[128,8], index: 5, kind: input, shape index: {}]   ;;  %s414_s6 = inlined_call_operand.vmem [shape: f32[1,8], index: 6, kind: input, shape index: {}]   ;;  %s415_s7 = inlined_call_operand.hbm [shape: f32[2,8], index: 7, kind: output, shape index: {}]  }
   0x1   :  { %13 = vsyncpa [#allocation4], 0  ;;  %s20_s26 = sshll.u32 %s409_s1, 4  ;;  %s249_s27 = smov [#allocation2]   ;;  %s21_s26 = int_to_ptr.hbm [resolvable:$true] %s20_s26 }
   0x2   :  { %s22_s28 = sshll.u32 %s249_s27, 4  ;;  %s250_s29 = smov 128   ;;  %s23_s28 = int_to_ptr.vmem [resolvable:$true] %s22_s28 }
   0x3   :  { %s251_s30 = smov 8  }
   0x4   :  { %28 = dma.hbm_to_vmem [thread:$0]  %s21_s26, 256, %s23_s28, [#allocation3], %s250_s29, %s250_s29, %s251_s30  }
   0x5   :  { %245 = dma.done.wait [#allocation3], 256  }
   0x6   :  { %246 = vsyncadd [#allocation3], 4294967040  ;;  %v45_v0 = vld [vmem:[#allocation2 + $0x8] sm:$0xff]  ;;  %v44_v1 = vld [vmem:[#allocation2] sm:$0xff]  ;;  %vm50_vm0 = vcmask 130048   ;;  %v252_v43 = vmov 10.0  }
   0x7   :  { %68 = vmatpush.msra.mxu0 %v45_v0  ;;  %v43_v2 = vld [vmem:[%s408_s0] sm:$0x3]  ;;  %v90_v3 = vld [vmem:[%s411_s3 + $0x78] sm:$0xff]  ;;  %v89_v4 = vld [vmem:[%s411_s3 + $0x70] sm:$0xff]  ;;  %193 = vrcp.f32 %v252_v43  ;;  %s174_s27 = sshll.u32 %s415_s7, 4  ;;  %vm165_vm2 = vcmask 58368   ;;  %s175_s27 = int_to_ptr.hbm [resolvable:$true] %s174_s27 }
   0x8   :  { %95 = vmatpush.msra.mxu1 %v90_v3  ;;  %v88_v5 = vld [vmem:[%s411_s3 + $0x68] sm:$0xff]  ;;  %v87_v6 = vld [vmem:[%s411_s3 + $0x60] sm:$0xff]  ;;  %v86_v7 = vld [vmem:[%s411_s3 + $0x58] sm:$0xff] }
   0x9   :  { %69 = vmatpush.msra.mxu0 %v44_v1  ;;  %v85_v8 = vld [vmem:[%s411_s3 + $0x50] sm:$0xff]  ;;  %v84_v9 = vld [vmem:[%s411_s3 + $0x48] sm:$0xff]  ;;  %v83_v10 = vld [vmem:[%s411_s3 + $0x40] sm:$0xff] }
   0xa   :  { %184 = vmatmul.msk.f32.vlgmr.msra.gmra.mxu0 %vm50_vm0, %v43_v2  ;;  %96 = vmatpush.msra.mxu1 %v89_v4  ;;  %v82_v11 = vld [vmem:[%s411_s3 + $0x38] sm:$0xff]  ;;  %v81_v12 = vld [vmem:[%s411_s3 + $0x30] sm:$0xff]  ;;  %v80_v13 = vld [vmem:[%s411_s3 + $0x28] sm:$0xff] }
   0xb   :  { %v79_v14 = vld [vmem:[%s411_s3 + $0x20] sm:$0xff]  ;;  %v78_v15 = vld [vmem:[%s411_s3 + $0x18] sm:$0xff]  ;;  %v77_v16 = vld [vmem:[%s411_s3 + $0x10] sm:$0xff] }
   0xc   :  { %97 = vmatpush.msra.mxu1 %v88_v5  ;;  %v76_v17 = vld [vmem:[%s411_s3 + $0x8] sm:$0xff]  ;;  %v75_v18 = vld [vmem:[%s411_s3] sm:$0xff]  ;;  %v131_v19 = vld [vmem:[%s413_s5 + $0x78] sm:$0xff] }
   0xd   :  { %v130_v20 = vld [vmem:[%s413_s5 + $0x70] sm:$0xff]  ;;  %136 = vmatpush.msra.mxu2 %v131_v19  ;;  %v129_v21 = vld [vmem:[%s413_s5 + $0x68] sm:$0xff]  ;;  %v128_v22 = vld [vmem:[%s413_s5 + $0x60] sm:$0xff]  ;;  %v194_v44 = vpop.eup %193 }
   0xe   :  { %98 = vmatpush.msra.mxu1 %v87_v6  ;;  %v127_v23 = vld [vmem:[%s413_s5 + $0x58] sm:$0xff]  ;;  %v126_v24 = vld [vmem:[%s413_s5 + $0x50] sm:$0xff]  ;;  %v125_v25 = vld [vmem:[%s413_s5 + $0x48] sm:$0xff]  ;;  %v158_v45 = vmul.f32 10.0, %v194_v44  ;;  %vm162_vm1 = vweird.f32 %v194_v44 }
   0xf   :  { %137 = vmatpush.msra.mxu2 %v130_v20  ;;  %v124_v26 = vld [vmem:[%s413_s5 + $0x40] sm:$0xff]  ;;  %v123_v27 = vld [vmem:[%s413_s5 + $0x38] sm:$0xff]  ;;  %v122_v28 = vld [vmem:[%s413_s5 + $0x30] sm:$0xff] }
  0x10   :  { %99 = vmatpush.msra.mxu1 %v86_v7  ;;  %v121_v29 = vld [vmem:[%s413_s5 + $0x28] sm:$0xff]  ;;  %v120_v30 = vld [vmem:[%s413_s5 + $0x20] sm:$0xff]  ;;  %v119_v31 = vld [vmem:[%s413_s5 + $0x18] sm:$0xff]  ;;  %v159_v46 = vsub.f32 1.0, %v158_v45 }
  0x11   :  { %138 = vmatpush.msra.mxu2 %v129_v21  ;;  %v190_v32 = vld [vmem:[%s410_s2] ss:$0 sm:$0xff]  ;;  %v118_v36 = vld [vmem:[%s413_s5 + $0x10] sm:$0xff]  ;;  %v117_v37 = vld [vmem:[%s413_s5 + $0x8] sm:$0xff] }
  0x12   :  { %100 = vmatpush.msra.mxu1 %v85_v8  ;;  %v116_v38 = vld [vmem:[%s413_s5] sm:$0xff]  ;;  %v160_v48 = vmul.f32 %v194_v44, %v159_v46 }
  0x13   :  { %139 = vmatpush.msra.mxu2 %v128_v22  ;;  %v191_v39 = vld [vmem:[%s412_s4] ss:$0 sm:$0xff]  ;;  %s253_s4 = smov [#allocation5]  }
  0x14   :  { %101 = vmatpush.msra.mxu1 %v84_v9  ;;  %v192_v47 = vld [vmem:[%s414_s6] ss:$0 sm:$0xff]  ;;  %v161_v51 = vadd.f32 %v194_v44, %v160_v48  ;;  %s172_s5 = sshll.u32 %s253_s4, 4  ;;  %s173_s5 = int_to_ptr.vmem [resolvable:$true] %s172_s5 }
  0x15   :  { %140 = vmatpush.msra.mxu2 %v127_v23 }
  0x16   :  { %102 = vmatpush.msra.mxu1 %v83_v10  ;;  %v163_v52 = vsel %vm162_vm1, %v194_v44, %v161_v51 }
  0x17   :  { %141 = vmatpush.msra.mxu2 %v126_v24 }
  0x18   :  { %103 = vmatpush.msra.mxu1 %v82_v11 }
  0x19   :  { %142 = vmatpush.msra.mxu2 %v125_v25 }
  0x1a   :  { %104 = vmatpush.msra.mxu1 %v81_v12 }
  0x1b   :  { %143 = vmatpush.msra.mxu2 %v124_v26 }
  0x1c   :  { %105 = vmatpush.msra.mxu1 %v80_v13 }
  0x1d   :  { %144 = vmatpush.msra.mxu2 %v123_v27 }
  0x1e   :  { %106 = vmatpush.msra.mxu1 %v79_v14 }
  0x1f   :  { %145 = vmatpush.msra.mxu2 %v122_v28 }
  0x20   :  { %107 = vmatpush.msra.mxu1 %v78_v15 }
  0x21   :  { %146 = vmatpush.msra.mxu2 %v121_v29 }
  0x22   :  { %108 = vmatpush.msra.mxu1 %v77_v16 }
  0x23   :  { %147 = vmatpush.msra.mxu2 %v120_v30 }
  0x24   :  { %109 = vmatpush.msra.mxu1 %v76_v17 }
  0x25   :  { %148 = vmatpush.msra.mxu2 %v119_v31 }
  0x26   :  { %110 = vmatpush.msra.mxu1 %v75_v18 }
  0x27   :  { %149 = vmatpush.msra.mxu2 %v118_v36 }
  0x29   :  { %150 = vmatpush.msra.mxu2 %v117_v37 }
  0x2b   :  { %151 = vmatpush.msra.mxu2 %v116_v38 }
  0x87   :  { %v71_v33 = vpop.f32.mrf.mxu0 }
  0x88   :  { %v72_v34 = vadd.f32 %v190_v32, %v71_v33 }
  0x8a   :  { %v74_v35 = vmax.f32 %v72_v34, 0.0 }
  0x8c   :  { %111 = vmatmul.f32.vlgmr.msra.gmra.mxu1 %v74_v35 }
 0x109   :  { %v112_v40 = vpop.f32.mrf.mxu1 }
 0x10a   :  { %v113_v41 = vadd.f32 %v191_v39, %v112_v40 }
 0x10c   :  { %v115_v42 = vmax.f32 %v113_v41, 0.0 }
 0x10e   :  { %152 = vmatmul.f32.vlgmr.msra.gmra.mxu2 %v115_v42 }
 0x191   :  { %v153_v49 = vpop.f32.mrf.mxu2 }
 0x192   :  { %v154_v50 = vadd.f32 %v192_v47, %v153_v49 }
 0x194   :  { %195 = vtanh.f32 %v154_v50 }
 0x19a   :  { %v196_v53 = vpop.eup %195 }
 0x19b   :  { %v164_v54 = vmul.f32 %v196_v53, %v163_v52 }
 0x19d   :  { %166 = vst.msk [vmem:[#allocation5] sm:$0x3] %vm165_vm2, %v164_v54 }
 0x19e   :  { %177 = dma.vmem_to_hbm [thread:$0]  %s173_s5, 32, %s175_s27, [#allocation4]  }
 0x19f   :  { %247 = dma.done.wait [#allocation4], 32  }
 0x1a0   :  { %248 = vsyncadd [#allocation4], 4294967264 }
 0x1a1   :  { %182 = vsyncpa [#allocation3], 1 }
 0x1a2   :  { %183 = vsyncpa [#allocation4], 1 }

</bundles_post_ra>
